<compile_context>
chip_gen: v7x
topology: tpu7x:2x2x1
jax: 0.10.0
libtpu: 0.0.40
codegen_flags: <defaults>
</compile_context>

<pallas_src>
import jax
import jax.numpy as jnp
from jax.experimental import pallas as pl
from jax.experimental.pallas import tpu as pltpu

_SUBLANES = 8  # sublane width (second-to-last dim granularity)


def _round_up(n, m):
    return ((n + m - 1) // m) * m


# --------------------------------------------------------------------------- #
# Kernel: one batch tile through the whole encoder/decoder chain.
# --------------------------------------------------------------------------- #
def autoencoder_kernel(x_ref,
                       w1_ref, b1_ref,   # encoder: input      -> hidden
                       w2_ref, b2_ref,   # encoder: hidden     -> bottleneck
                       w3_ref, b3_ref,   # decoder: bottleneck -> hidden
                       w4_ref, b4_ref,   # decoder: hidden     -> input
                       out_ref):
    x = x_ref[...].astype(jnp.bfloat16)                       # (TB, Din) bf16 for MXU

    # ---- encoder ----
    h1 = jnp.dot(x, w1_ref[...],
                 preferred_element_type=jnp.float32) + b1_ref[...]
    h1 = jnp.maximum(h1, 0.0).astype(jnp.bfloat16)            # ReLU
    z = jnp.dot(h1, w2_ref[...],
                preferred_element_type=jnp.float32) + b2_ref[...]
    z = jnp.maximum(z, 0.0).astype(jnp.bfloat16)              # ReLU (bottleneck)

    # ---- decoder ----
    h2 = jnp.dot(z, w3_ref[...],
                 preferred_element_type=jnp.float32) + b3_ref[...]
    h2 = jnp.maximum(h2, 0.0).astype(jnp.bfloat16)            # ReLU
    y = jnp.dot(h2, w4_ref[...],
                preferred_element_type=jnp.float32) + b4_ref[...]   # last layer linear

    out_ref[...] = y.astype(out_ref.dtype)


# --------------------------------------------------------------------------- #
# Host-side parameter prep: cast weights to bf16 (MXU operands), biases stay fp32.
# No feature padding (MXU K/N need not be 128; avoids zero-FLOP work).
# --------------------------------------------------------------------------- #
def prepare_params(params_f32):
    out = {}
    for k, v in params_f32.items():
        out[k] = v.astype(jnp.bfloat16) if k.startswith("w") else v.astype(jnp.float32)
    return out


def _choose_batch_tile(B, block_batch):
    """Batch tile: multiple of 8 sublanes, capped by block_batch, and split so the
    grid has >= 2 steps whenever that is possible without over-padding."""
    b8 = _round_up(B, _SUBLANES)
    tb = min(_round_up(max(block_batch, _SUBLANES), _SUBLANES), b8)
    if tb >= b8 and b8 >= 2 * _SUBLANES and b8 % (2 * _SUBLANES) == 0:
        tb = b8 // 2          # >=2 grid steps: pipelining + v7x megacore split
    b_pad = _round_up(B, tb)
    return tb, b_pad


# --------------------------------------------------------------------------- #
# Forward wrapper.
# --------------------------------------------------------------------------- #
def autoencoder_forward(x, params, *, block_batch=1024):
    B, input_size = x.shape
    p = params
    assert p["w1"].shape[0] == input_size and p["w4"].shape[1] == input_size

    tb, b_pad = _choose_batch_tile(B, block_batch)
    n_tiles = b_pad // tb

    # Only the batch dim is ever padded (and only when B is not a multiple of tb).
    x_in = x if b_pad == B else jnp.pad(x, ((0, b_pad - B), (0, 0)))

    resident = lambda arr: pl.BlockSpec(arr.shape, lambda i: (0, 0))

    out = pl.pallas_call(
        autoencoder_kernel,
        out_shape=jax.ShapeDtypeStruct((b_pad, input_size), jnp.float32),
        grid=(n_tiles,),
        in_specs=[
            pl.BlockSpec((tb, input_size), lambda i: (i, 0)),   # x tile (pipelined)
            resident(p["w1"]), resident(p["b1"]),               # weights/biases resident
            resident(p["w2"]), resident(p["b2"]),
            resident(p["w3"]), resident(p["b3"]),
            resident(p["w4"]), resident(p["b4"]),
        ],
        out_specs=pl.BlockSpec((tb, input_size), lambda i: (i, 0)),
        compiler_params=pltpu.CompilerParams(
            dimension_semantics=("parallel",)),                 # megacore on v7x
    )(x_in,
      p["w1"], p["b1"], p["w2"], p["b2"],
      p["w3"], p["b3"], p["w4"], p["b4"])

    return out if b_pad == B else out[:B]


# --------------------------------------------------------------------------- #
# Init (mimics PyTorch nn.Linear default U[-1/sqrt(fan_in), 1/sqrt(fan_in)]).
# Weights stored transposed vs. PyTorch: (in_features, out_features).
# --------------------------------------------------------------------------- #
def init_linear(key, fan_in, fan_out):
    kw, kb = jax.random.split(key)
    bound = 1.0 / jnp.sqrt(jnp.float32(fan_in))
    w = jax.random.uniform(kw, (fan_in, fan_out), jnp.float32, -bound, bound)
    b = jax.random.uniform(kb, (1, fan_out), jnp.float32, -bound, bound)
    return w, b


def init_autoencoder_params(key, input_size, hidden_size, bottleneck_size):
    k1, k2, k3, k4 = jax.random.split(key, 4)
    w1, b1 = init_linear(k1, input_size, hidden_size)        # encoder L1
    w2, b2 = init_linear(k2, hidden_size, bottleneck_size)   # encoder L2
    w3, b3 = init_linear(k3, bottleneck_size, hidden_size)   # decoder L1
    w4, b4 = init_linear(k4, hidden_size, input_size)        # decoder L2
    return dict(w1=w1, b1=b1, w2=w2, b2=b2, w3=w3, b3=b3, w4=w4, b4=b4)


# --------------------------------------------------------------------------- #
# Plain-JAX reference replicating the PyTorch forward (same bf16 MXU casts,
# fp32 accumulation / elementwise as the kernel).
# --------------------------------------------------------------------------- #
def reference_forward(x, p):
    bf, f32 = jnp.bfloat16, jnp.float32
    h1 = jnp.maximum(jnp.dot(x.astype(bf), p["w1"].astype(bf),
                             preferred_element_type=f32) + p["b1"], 0.0)
    z = jnp.maximum(jnp.dot(h1.astype(bf), p["w2"].astype(bf),
                            preferred_element_type=f32) + p["b2"], 0.0)
    h2 = jnp.maximum(jnp.dot(z.astype(bf), p["w3"].astype(bf),
                             preferred_element_type=f32) + p["b3"], 0.0)
    return jnp.dot(h2.astype(bf), p["w4"].astype(bf),
                   preferred_element_type=f32) + p["b4"]


if __name__ == "__main__":
    # Small-but-non-trivial batch so the grid actually pipelines (2 tiles of 128).
    batch = 256
    input_size = 32
    hidden_size = 64
    bottleneck_size = 16

    key = jax.random.PRNGKey(0)
    kx, kp = jax.random.split(key)

    x = jax.random.normal(kx, (batch, input_size), jnp.float32)
    params = init_autoencoder_params(kp, input_size, hidden_size, bottleneck_size)
    kernel_params = prepare_params(params)

    out = autoencoder_forward(x, kernel_params)
    out = jax.block_until_ready(out)

    ref = jax.block_until_ready(reference_forward(x, params))
    assert out.shape == (batch, input_size)
    assert jnp.allclose(out, ref, atol=1e-2, rtol=1e-2), "mismatch vs reference"

    print("KERNEL_OK")
</pallas_src>

<mosaic_0001>
module attributes {stable_mosaic.version = 11 : i64} {
  func.func @autoencoder_kernel(%arg0: i32, %arg1: memref<128x32xf32, #tpu.memory_space<vmem>>, %arg2: memref<32x64xbf16, #tpu.memory_space<vmem>>, %arg3: memref<1x64xf32, #tpu.memory_space<vmem>>, %arg4: memref<64x16xbf16, #tpu.memory_space<vmem>>, %arg5: memref<1x16xf32, #tpu.memory_space<vmem>>, %arg6: memref<16x64xbf16, #tpu.memory_space<vmem>>, %arg7: memref<1x64xf32, #tpu.memory_space<vmem>>, %arg8: memref<64x32xbf16, #tpu.memory_space<vmem>>, %arg9: memref<1x32xf32, #tpu.memory_space<vmem>>, %arg10: memref<128x32xf32, #tpu.memory_space<vmem>>) attributes {dimension_semantics = [#tpu.dimension_semantics<parallel>], iteration_bounds = array<i64: 2>, scalar_prefetch = 0 : i64, scratch_operands = 0 : i64, tpu.core_type = #tpu.core_type<tc>, window_params = [{transform_indices = @transform_0, window_bounds = array<i64: 128, 32>}, {pipeline_mode = #tpu.pipeline_mode<synchronous>, transform_indices = @transform_1, window_bounds = array<i64: 32, 64>}, {pipeline_mode = #tpu.pipeline_mode<synchronous>, transform_indices = @transform_2, window_bounds = array<i64: 1, 64>}, {pipeline_mode = #tpu.pipeline_mode<synchronous>, transform_indices = @transform_3, window_bounds = array<i64: 64, 16>}, {pipeline_mode = #tpu.pipeline_mode<synchronous>, transform_indices = @transform_4, window_bounds = array<i64: 1, 16>}, {pipeline_mode = #tpu.pipeline_mode<synchronous>, transform_indices = @transform_5, window_bounds = array<i64: 16, 64>}, {pipeline_mode = #tpu.pipeline_mode<synchronous>, transform_indices = @transform_6, window_bounds = array<i64: 1, 64>}, {pipeline_mode = #tpu.pipeline_mode<synchronous>, transform_indices = @transform_7, window_bounds = array<i64: 64, 32>}, {pipeline_mode = #tpu.pipeline_mode<synchronous>, transform_indices = @transform_8, window_bounds = array<i64: 1, 32>}, {transform_indices = @transform_9, window_bounds = array<i64: 128, 32>}]} {
    %c0 = arith.constant 0 : index
    %c0_0 = arith.constant 0 : index
    %0 = vector.load %arg1[%c0, %c0_0] : memref<128x32xf32, #tpu.memory_space<vmem>>, vector<128x32xf32>
    %1 = arith.truncf %0 : vector<128x32xf32> to vector<128x32xbf16>
    %c0_1 = arith.constant 0 : index
    %c0_2 = arith.constant 0 : index
    %2 = vector.load %arg2[%c0_1, %c0_2] : memref<32x64xbf16, #tpu.memory_space<vmem>>, vector<32x64xbf16>
    %cst = arith.constant dense<0.000000e+00> : vector<128x64xf32>
    %3 = tpu.matmul %1, %2, %cst {dimension_numbers = #tpu.dot_dimension_numbers<[1], [0], [0], [1], [0, 0, 1, 1], [], []>} : vector<128x32xbf16>, vector<32x64xbf16>, vector<128x64xf32> -> vector<128x64xf32>
    %c0_3 = arith.constant 0 : index
    %c0_4 = arith.constant 0 : index
    %4 = vector.load %arg3[%c0_3, %c0_4] : memref<1x64xf32, #tpu.memory_space<vmem>>, vector<1x64xf32>
    %5 = vector.broadcast %4 : vector<1x64xf32> to vector<128x64xf32>
    %6 = arith.addf %3, %5 : vector<128x64xf32>
    %cst_5 = arith.constant 0.000000e+00 : f32
    %7 = vector.broadcast %cst_5 : f32 to vector<128x64xf32>
    %8 = arith.maximumf %6, %7 : vector<128x64xf32>
    %9 = arith.truncf %8 : vector<128x64xf32> to vector<128x64xbf16>
    %c0_6 = arith.constant 0 : index
    %c0_7 = arith.constant 0 : index
    %10 = vector.load %arg4[%c0_6, %c0_7] : memref<64x16xbf16, #tpu.memory_space<vmem>>, vector<64x16xbf16>
    %cst_8 = arith.constant dense<0.000000e+00> : vector<128x16xf32>
    %11 = tpu.matmul %9, %10, %cst_8 {dimension_numbers = #tpu.dot_dimension_numbers<[1], [0], [0], [1], [0, 0, 1, 1], [], []>} : vector<128x64xbf16>, vector<64x16xbf16>, vector<128x16xf32> -> vector<128x16xf32>
    %c0_9 = arith.constant 0 : index
    %c0_10 = arith.constant 0 : index
    %12 = vector.load %arg5[%c0_9, %c0_10] : memref<1x16xf32, #tpu.memory_space<vmem>>, vector<1x16xf32>
    %13 = vector.broadcast %12 : vector<1x16xf32> to vector<128x16xf32>
    %14 = arith.addf %11, %13 : vector<128x16xf32>
    %cst_11 = arith.constant 0.000000e+00 : f32
    %15 = vector.broadcast %cst_11 : f32 to vector<128x16xf32>
    %16 = arith.maximumf %14, %15 : vector<128x16xf32>
    %17 = arith.truncf %16 : vector<128x16xf32> to vector<128x16xbf16>
    %c0_12 = arith.constant 0 : index
    %c0_13 = arith.constant 0 : index
    %18 = vector.load %arg6[%c0_12, %c0_13] : memref<16x64xbf16, #tpu.memory_space<vmem>>, vector<16x64xbf16>
    %cst_14 = arith.constant dense<0.000000e+00> : vector<128x64xf32>
    %19 = tpu.matmul %17, %18, %cst_14 {dimension_numbers = #tpu.dot_dimension_numbers<[1], [0], [0], [1], [0, 0, 1, 1], [], []>} : vector<128x16xbf16>, vector<16x64xbf16>, vector<128x64xf32> -> vector<128x64xf32>
    %c0_15 = arith.constant 0 : index
    %c0_16 = arith.constant 0 : index
    %20 = vector.load %arg7[%c0_15, %c0_16] : memref<1x64xf32, #tpu.memory_space<vmem>>, vector<1x64xf32>
    %21 = vector.broadcast %20 : vector<1x64xf32> to vector<128x64xf32>
    %22 = arith.addf %19, %21 : vector<128x64xf32>
    %cst_17 = arith.constant 0.000000e+00 : f32
    %23 = vector.broadcast %cst_17 : f32 to vector<128x64xf32>
    %24 = arith.maximumf %22, %23 : vector<128x64xf32>
    %25 = arith.truncf %24 : vector<128x64xf32> to vector<128x64xbf16>
    %c0_18 = arith.constant 0 : index
    %c0_19 = arith.constant 0 : index
    %26 = vector.load %arg8[%c0_18, %c0_19] : memref<64x32xbf16, #tpu.memory_space<vmem>>, vector<64x32xbf16>
    %cst_20 = arith.constant dense<0.000000e+00> : vector<128x32xf32>
    %27 = tpu.matmul %25, %26, %cst_20 {dimension_numbers = #tpu.dot_dimension_numbers<[1], [0], [0], [1], [0, 0, 1, 1], [], []>} : vector<128x64xbf16>, vector<64x32xbf16>, vector<128x32xf32> -> vector<128x32xf32>
    %c0_21 = arith.constant 0 : index
    %c0_22 = arith.constant 0 : index
    %28 = vector.load %arg9[%c0_21, %c0_22] : memref<1x32xf32, #tpu.memory_space<vmem>>, vector<1x32xf32>
    %29 = vector.broadcast %28 : vector<1x32xf32> to vector<128x32xf32>
    %30 = arith.addf %27, %29 : vector<128x32xf32>
    %c0_23 = arith.constant 0 : index
    %c0_24 = arith.constant 0 : index
    %31 = vector.load %arg10[%c0_23, %c0_24] : memref<128x32xf32, #tpu.memory_space<vmem>>, vector<128x32xf32>
    tpu.vector_store %arg10[%c0_23, %c0_24], %30 {strides = array<i32>} : memref<128x32xf32, #tpu.memory_space<vmem>>, vector<128x32xf32>,
    return
  }
  func.func @transform_0(%arg0: i32) -> (i32, i32) {
    %c0_i32 = arith.constant 0 : i32
    %c0_i32_0 = arith.constant 0 : i32
    return %arg0, %c0_i32 : i32, i32
  }
  func.func @transform_1(%arg0: i32) -> (i32, i32) {
    %c0_i32 = arith.constant 0 : i32
    %c0_i32_0 = arith.constant 0 : i32
    %c0_i32_1 = arith.constant 0 : i32
    return %c0_i32, %c0_i32_0 : i32, i32
  }
  func.func @transform_2(%arg0: i32) -> (i32, i32) {
    %c0_i32 = arith.constant 0 : i32
    %c0_i32_0 = arith.constant 0 : i32
    %c0_i32_1 = arith.constant 0 : i32
    return %c0_i32, %c0_i32_0 : i32, i32
  }
  func.func @transform_3(%arg0: i32) -> (i32, i32) {
    %c0_i32 = arith.constant 0 : i32
    %c0_i32_0 = arith.constant 0 : i32
    %c0_i32_1 = arith.constant 0 : i32
    return %c0_i32, %c0_i32_0 : i32, i32
  }
  func.func @transform_4(%arg0: i32) -> (i32, i32) {
    %c0_i32 = arith.constant 0 : i32
    %c0_i32_0 = arith.constant 0 : i32
    %c0_i32_1 = arith.constant 0 : i32
    return %c0_i32, %c0_i32_0 : i32, i32
  }
  func.func @transform_5(%arg0: i32) -> (i32, i32) {
    %c0_i32 = arith.constant 0 : i32
    %c0_i32_0 = arith.constant 0 : i32
    %c0_i32_1 = arith.constant 0 : i32
    return %c0_i32, %c0_i32_0 : i32, i32
  }
  func.func @transform_6(%arg0: i32) -> (i32, i32) {
    %c0_i32 = arith.constant 0 : i32
    %c0_i32_0 = arith.constant 0 : i32
    %c0_i32_1 = arith.constant 0 : i32
    return %c0_i32, %c0_i32_0 : i32, i32
  }
  func.func @transform_7(%arg0: i32) -> (i32, i32) {
    %c0_i32 = arith.constant 0 : i32
    %c0_i32_0 = arith.constant 0 : i32
    %c0_i32_1 = arith.constant 0 : i32
    return %c0_i32, %c0_i32_0 : i32, i32
  }
  func.func @transform_8(%arg0: i32) -> (i32, i32) {
    %c0_i32 = arith.constant 0 : i32
    %c0_i32_0 = arith.constant 0 : i32
    %c0_i32_1 = arith.constant 0 : i32
    return %c0_i32, %c0_i32_0 : i32, i32
  }
  func.func @transform_9(%arg0: i32) -> (i32, i32) {
    %c0_i32 = arith.constant 0 : i32
    %c0_i32_0 = arith.constant 0 : i32
    return %arg0, %c0_i32 : i32, i32
  }
}

</mosaic_0001>

<bundles_post_ra>
// kernel: tpu_custom_call.1
= control target key start
LH: loop header
LB: loop body
LE: loop exit
PB: predicated region body
PF: predicated region fallthrough
CT: control target
= control target key end

     0   :  { %s1372_s30 = smov 0   ;;  %s1525_s0 = inlined_call_operand.vmem [shape: f32[256,32], index: 0, kind: input, shape index: {}]   ;;  %s1526_s1 = inlined_call_operand.vmem [shape: bf16[32,64], index: 1, kind: input, shape index: {}]   ;;  %s1527_s2 = inlined_call_operand.vmem [shape: f32[1,64], index: 2, kind: input, shape index: {}]   ;;  %s1528_s3 = inlined_call_operand.vmem [shape: bf16[64,16], index: 3, kind: input, shape index: {}]   ;;  %s1529_s4 = inlined_call_operand.vmem [shape: f32[1,16], index: 4, kind: input, shape index: {}]   ;;  %s1530_s5 = inlined_call_operand.vmem [shape: bf16[16,64], index: 5, kind: input, shape index: {}]   ;;  %s1531_s6 = inlined_call_operand.vmem [shape: f32[1,64], index: 6, kind: input, shape index: {}]   ;;  %s1532_s7 = inlined_call_operand.vmem [shape: bf16[64,32], index: 7, kind: input, shape index: {}]   ;;  %s1533_s8 = inlined_call_operand.vmem [shape: f32[1,32], index: 8, kind: input, shape index: {}]   ;;  %s1534_s9 = inlined_call_operand.vmem [shape: f32[256,32], index: 9, kind: output, shape index: {}]  }
   0x1 LB: > { %s1108_s10 = sadd.s32 4294967295, %s1320_s30   ;;  %p1112_p0 = scmp.ge.s32.totalorder %s1320_s30, 1  ;;  %s1320_s30 = sphi %s1372_s30, %s19_s30  }
   0x2   : > { %p288_p1 = scmp.lt.s32.totalorder %s1320_s30, 3 }
   0x4   : > { %p289_p2 = pnand %p1112_p0, %p288_p1 }
   0x5   : > { %v1303_v0 = vld [vmem:[%s1526_s1] sm:$0xff] (!%p289_p2)   ;;  %s1113_s13 = sshll.u32 (!%p289_p2), %s1108_s10, 4  ;;  %v1304_v1 = vld [vmem:[%s1526_s1 + $0x8] sm:$0xff] (!%p289_p2)   ;;  %vm384_vm0 = vcmask (!%p289_p2), 261120   ;;  %v1307_v28 = vld [vmem:[%s1528_s3 + $0x10] sm:$0xff] (!%p289_p2)   ;;  %vm569_vm1 = vcmask (!%p289_p2), 523264  }
   0x6   : > { %292 = sbr.rel (%p289_p2) target bundleno = 928 (0x3a0), region = 56  ;;  %p325_p3 = scmp.lt.s32.totalorder (!%p289_p2), %s1113_s13, 31  ;;  %1209 = vmatprep.subr.bf16.mxu0 (!%p289_p2), %v1303_v0  ;;  %v1305_v2 = vld [vmem:[%s1528_s3] sm:$0xff] (!%p289_p2)   ;;  %v1306_v3 = vld [vmem:[%s1528_s3 + $0x8] sm:$0xff] (!%p289_p2)   ;;  %v1308_v29 = vld [vmem:[%s1528_s3 + $0x18] sm:$0xff] (!%p289_p2)   ;;  %vm730_vm2 = vcmask (!%p289_p2), 130048  }
   0x7   : > { %1210 = vmatpush3.bf16.msra.mxu0 (!%p289_p2), %v1303_v0  ;;  %1229 = vmatprep.subr.bf16.mxu1 (!%p289_p2), %v1305_v2  ;;  %v1309_v30 = vld [vmem:[%s1530_s5] sm:$0xff] (!%p289_p2)  }
   0x8   : > { %1211 = vmatprep.subr.bf16.mxu0 (!%p289_p2), %v1304_v1  ;;  %1230 = vmatpush3.bf16.msra.mxu1 (!%p289_p2), %v1305_v2  ;;  %v1117_v31 = vld [vmem:[%s1527_s2] ss:$0 sm:$0xff] (!%p289_p2) }
   0x9   : > { %1231 = vmatprep.subr.bf16.mxu1 (!%p289_p2), %v1306_v3 }
   0xb   : > { %1212 = vmatpush3.bf16.msra.mxu0 (!%p289_p2), %v1304_v1 }
   0xc   : > { %1232 = vmatpush3.bf16.msra.mxu1 (!%p289_p2), %v1306_v3  ;;  %1253 = vmatprep.subr.bf16.mxu0 (!%p289_p2), %v1309_v30 }
   0xd   : > { %s1536_s13 = smov (!%p325_p3, %s1113_s13), 31  ;;  %1233 = vmatprep.subr.bf16.mxu1 %v1307_v28 }
   0xe   : > { %s1114_s20 = sshll.u32 %s1536_s13, 3 }
   0xf   : > { %s1400_s23 = scalar_lea.vmem %s1525_s0, %s1114_s20  ;;  %s1488_s10 = scalar_lea.vmem %s1534_s9, %s1114_s20 }
  0x10   : > { %v337_v4 = vld [vmem:[%s1400_s23] sm:$0xff]  ;;  %v338_v5 = vld [vmem:[%s1400_s23 + $0x8] sm:$0xff]  ;;  %v339_v6 = vld [vmem:[%s1400_s23 + $0x10] sm:$0xff]  ;;  %1234 = vmatpush3.bf16.msra.mxu1 %v1307_v28 }
  0x11   : > { %v353_v7 = vpack.c.bf16 %v338_v5, %v337_v4  ;;  %v340_v8 = vld [vmem:[%s1400_s23 + $0x18] sm:$0xff]  ;;  %v341_v9 = vld [vmem:[%s1400_s23 + $0x20] sm:$0xff]  ;;  %v342_v10 = vld [vmem:[%s1400_s23 + $0x28] sm:$0xff]  ;;  %1235 = vmatprep.subr.bf16.mxu1 %v1308_v29 }
  0x12   : > { %v354_v11 = vpack.c.bf16 %v340_v8, %v339_v6  ;;  %v355_v12 = vpack.c.bf16 %v342_v10, %v341_v9  ;;  %v343_v13 = vld [vmem:[%s1400_s23 + $0x30] sm:$0xff]  ;;  %v344_v14 = vld [vmem:[%s1400_s23 + $0x38] sm:$0xff]  ;;  %v345_v15 = vld [vmem:[%s1400_s23 + $0x40] sm:$0xff] }
  0x13   : > { %1213 = vmatprep.mubr.msk.bf16.mxu0 %vm384_vm0, %v353_v7  ;;  %v346_v16 = vld [vmem:[%s1400_s23 + $0x48] sm:$0xff]  ;;  %v356_v17 = vpack.c.bf16 %v344_v14, %v343_v13  ;;  %v347_v19 = vld [vmem:[%s1400_s23 + $0x50] sm:$0xff]  ;;  %v348_v20 = vld [vmem:[%s1400_s23 + $0x58] sm:$0xff] }
  0x14   : > { %1214 = vmatmul.mubr.msk.bf16.vlgmr.msra.gmra.mrb[0].mxu0 %vm384_vm0, %v354_v11  ;;  %v357_v18 = vpack.c.bf16 %v346_v16, %v345_v15  ;;  %v349_v21 = vld [vmem:[%s1400_s23 + $0x60] sm:$0xff]  ;;  %v350_v22 = vld [vmem:[%s1400_s23 + $0x68] sm:$0xff]  ;;  %v358_v23 = vpack.c.bf16 %v348_v20, %v347_v19  ;;  %v351_v25 = vld [vmem:[%s1400_s23 + $0x70] sm:$0xff]  ;;  %1236 = vmatpush3.bf16.msra.mxu1 %v1308_v29 }
  0x15   : > { %1217 = vmatprep.mubr.msk.bf16.mxu0 %vm384_vm0, %v355_v12  ;;  %v359_v24 = vpack.c.bf16 %v350_v22, %v349_v21  ;;  %v352_v26 = vld [vmem:[%s1400_s23 + $0x78] sm:$0xff]  ;;  %1254 = vmatpush3.bf16.msra.mxu0 %v1309_v30 }
  0x16   : > { %v360_v27 = vpack.c.bf16 %v352_v26, %v351_v25  ;;  %v1311_v25 = vld [vmem:[%s1532_s7 + $0x8] sm:$0xff]   ;;  %v1312_v26 = vld [vmem:[%s1532_s7 + $0x10] sm:$0xff]  }
  0x1c   : > { %1218 = vmatmul.mubr.msk.bf16.gmra.mrb[4].mxu0 %vm384_vm0, %v356_v17 }
  0x1d   : > { %1221 = vmatprep.mubr.msk.bf16.mxu0 %vm384_vm0, %v357_v18 }
  0x24   : > { %1222 = vmatmul.mubr.msk.bf16.gmra.mrb[8].mxu0 %vm384_vm0, %v358_v23 }
  0x25   : > { %1225 = vmatprep.mubr.msk.bf16.mxu0 %vm384_vm0, %v359_v24  ;;  %v1310_v24 = vld [vmem:[%s1532_s7] sm:$0xff]  }
  0x26   : > { %1271 = vmatprep.subr.bf16.mxu1 %v1310_v24 }
  0x2c   : > { %1226 = vmatmul.mubr.msk.bf16.gmra.mrb[12].mxu0 %vm384_vm0, %v360_v27  ;;  %v1128_v27 = vld [vmem:[%s1529_s4] ss:$0 sm:$0xff] }
  0xe7   : > { %v1215_v32 = vpop.f32.mrb[0].mxu0 }
  0xe8   : > { %v452_v33 = vadd.f32 %v1215_v32, %v1117_v31  ;;  %v443_v34 = vpop.f32.mrb[1].mxu0 }
  0xe9   : > { %v444_v35 = vadd.f32 %v1117_v31, %v443_v34  ;;  %v1216_v36 = vpop.f32.mrb[2].mxu0 }
  0xea   : > { %v455_v37 = vadd.f32 %v1216_v36, %v1117_v31  ;;  %v446_v38 = vpop.f32.mrb[3].mxu0  ;;  %v508_v40 = vmax.f32 %v452_v33, 0.0 }
  0xeb   : > { %v447_v39 = vadd.f32 %v1117_v31, %v446_v38  ;;  %v506_v42 = vmax.f32 %v444_v35, 0.0 }
  0xec   : > { %v509_v41 = vmax.f32 %v455_v37, 0.0 }
  0xed   : > { %v507_v43 = vmax.f32 %v447_v39, 0.0 }
  0xee   : > { %v523_v44 = vpack.c.bf16 %v509_v41, %v508_v40 }
  0xef   : > { %v1219_v45 = vpop.f32.mrb[4].mxu0  ;;  %v522_v46 = vpack.c.bf16 %v507_v43, %v506_v42 }
  0xf0   : > { %v468_v47 = vadd.f32 %v1219_v45, %v1117_v31  ;;  %v459_v48 = vpop.f32.mrb[5].mxu0 }
  0xf1   : > { %v460_v49 = vadd.f32 %v1117_v31, %v459_v48  ;;  %v1220_v50 = vpop.f32.mrb[6].mxu0  ;;  %1237 = vmatprep.mubr.msk.bf16.mxu1 %vm569_vm1, %v522_v46 }
  0xf2   : > { %v471_v51 = vadd.f32 %v1220_v50, %v1117_v31  ;;  %v462_v52 = vpop.f32.mrb[7].mxu0  ;;  %1238 = vmatmul.mubr.msk.bf16.vlgmr.msra.gmra.mrb[0].mxu1 %vm569_vm1, %v523_v44  ;;  %v512_v54 = vmax.f32 %v468_v47, 0.0 }
  0xf3   : > { %v463_v53 = vadd.f32 %v1117_v31, %v462_v52  ;;  %v510_v56 = vmax.f32 %v460_v49, 0.0  ;;  %1272 = vmatpush3.bf16.msra.mxu1 %v1310_v24 }
  0xf4   : > { %v513_v55 = vmax.f32 %v471_v51, 0.0  ;;  %1273 = vmatprep.subr.bf16.mxu1 %v1311_v25 }
  0xf5   : > { %v511_v57 = vmax.f32 %v463_v53, 0.0 }
  0xf6   : > { %v525_v58 = vpack.c.bf16 %v513_v55, %v512_v54 }
  0xf7   : > { %v524_v59 = vpack.c.bf16 %v511_v57, %v510_v56  ;;  %v1223_v60 = vpop.f32.mrb[8].mxu0  ;;  %1274 = vmatpush3.bf16.msra.mxu1 %v1311_v25 }
  0xf8   : > { %v484_v61 = vadd.f32 %v1223_v60, %v1117_v31  ;;  %v475_v62 = vpop.f32.mrb[9].mxu0  ;;  %1275 = vmatprep.subr.bf16.mxu1 %v1312_v26 }
  0xf9   : > { %v476_v63 = vadd.f32 %v1117_v31, %v475_v62  ;;  %v1224_v0 = vpop.f32.mrb[10].mxu0  ;;  %1241 = vmatprep.mubr.msk.bf16.mxu1 %vm569_vm1, %v524_v59 }
  0xfa   : > { %v487_v1 = vadd.f32 %v1224_v0, %v1117_v31  ;;  %v478_v2 = vpop.f32.mrb[11].mxu0  ;;  %1242 = vmatmul.mubr.msk.bf16.gmra.mrb[4].mxu1 %vm569_vm1, %v525_v58  ;;  %v516_v4 = vmax.f32 %v484_v61, 0.0 }
  0xfb   : > { %v479_v3 = vadd.f32 %v1117_v31, %v478_v2  ;;  %v514_v6 = vmax.f32 %v476_v63, 0.0  ;;  %1276 = vmatpush3.bf16.msra.mxu1 %v1312_v26 }
  0xfc   : > { %v517_v5 = vmax.f32 %v487_v1, 0.0 }
  0xfd   : > { %v515_v7 = vmax.f32 %v479_v3, 0.0 }
  0xfe   : > { %v527_v8 = vpack.c.bf16 %v517_v5, %v516_v4 }
  0xff   : > { %v526_v9 = vpack.c.bf16 %v515_v7, %v514_v6  ;;  %v1227_v10 = vpop.f32.mrb[12].mxu0 }
 0x100   : > { %v500_v11 = vadd.f32 %v1227_v10, %v1117_v31  ;;  %v491_v12 = vpop.f32.mrb[13].mxu0 }
 0x101   : > { %v492_v13 = vadd.f32 %v1117_v31, %v491_v12  ;;  %v1228_v14 = vpop.f32.mrb[14].mxu0  ;;  %1245 = vmatprep.mubr.msk.bf16.mxu1 %vm569_vm1, %v526_v9 }
 0x102   : > { %v503_v15 = vadd.f32 %v1228_v14, %v1117_v31  ;;  %v494_v16 = vpop.f32.mrb[15].mxu0  ;;  %1246 = vmatmul.mubr.msk.bf16.gmra.mrb[8].mxu1 %vm569_vm1, %v527_v8  ;;  %v520_v18 = vmax.f32 %v500_v11, 0.0 }
 0x103   : > { %v495_v17 = vadd.f32 %v1117_v31, %v494_v16  ;;  %v518_v20 = vmax.f32 %v492_v13, 0.0 }
 0x104   : > { %v521_v19 = vmax.f32 %v503_v15, 0.0 }
 0x105   : > { %v519_v21 = vmax.f32 %v495_v17, 0.0 }
 0x106   : > { %v529_v22 = vpack.c.bf16 %v521_v19, %v520_v18 }
 0x107   : > { %v528_v23 = vpack.c.bf16 %v519_v21, %v518_v20  ;;  %v1313_v20 = vld [vmem:[%s1532_s7 + $0x18] sm:$0xff]   ;;  %v1141_v21 = vld [vmem:[%s1531_s6] ss:$0 sm:$0xff] }
 0x108   : > { %1277 = vmatprep.subr.bf16.mxu1 %v1313_v20 }
 0x109   : > { %1249 = vmatprep.mubr.msk.bf16.mxu1 %vm569_vm1, %v528_v23  ;;  %1278 = vmatpush3.bf16.msra.mxu1 %v1313_v20 }
 0x10a   : > { %1250 = vmatmul.mubr.msk.bf16.gmra.mrb[12].mxu1 %vm569_vm1, %v529_v22 }
 0x1c5   : > { %v1239_v28 = vpop.f32.mrb[0].mxu1 }
 0x1c6   : > { %v637_v29 = vadd.f32 %v1239_v28, %v1128_v27  ;;  %v628_v30 = vpop.f32.mrb[1].mxu1 }
 0x1c7   : > { %v629_v31 = vadd.f32 %v1128_v27, %v628_v30  ;;  %v1240_v32 = vpop.f32.mrb[2].mxu1 }
 0x1c8   : > { %v640_v33 = vadd.f32 %v1240_v32, %v1128_v27  ;;  %v631_v34 = vpop.f32.mrb[3].mxu1  ;;  %v693_v36 = vmax.f32 %v637_v29, 0.0 }
 0x1c9   : > { %v632_v35 = vadd.f32 %v1128_v27, %v631_v34  ;;  %v691_v38 = vmax.f32 %v629_v31, 0.0 }
 0x1ca   : > { %v694_v37 = vmax.f32 %v640_v33, 0.0 }
 0x1cb   : > { %v692_v39 = vmax.f32 %v632_v35, 0.0 }
 0x1cc   : > { %v708_v40 = vpack.c.bf16 %v694_v37, %v693_v36 }
 0x1cd   : > { %v707_v41 = vpack.c.bf16 %v692_v39, %v691_v38  ;;  %v1243_v42 = vpop.f32.mrb[4].mxu1 }
 0x1ce   : > { %v653_v43 = vadd.f32 %v1243_v42, %v1128_v27  ;;  %v644_v44 = vpop.f32.mrb[5].mxu1 }
 0x1cf   : > { %v645_v45 = vadd.f32 %v1128_v27, %v644_v44  ;;  %v1244_v46 = vpop.f32.mrb[6].mxu1  ;;  %1255 = vmatprep.mubr.msk.bf16.mxu0 %vm730_vm2, %v707_v41 }
 0x1d0   : > { %v656_v47 = vadd.f32 %v1244_v46, %v1128_v27  ;;  %v647_v48 = vpop.f32.mrb[7].mxu1  ;;  %1256 = vmatmul.mubr.msk.bf16.vlgmr.msra.gmra.mrb[16].mxu0 %vm730_vm2, %v708_v40  ;;  %v697_v50 = vmax.f32 %v653_v43, 0.0 }
 0x1d1   : > { %v648_v49 = vadd.f32 %v1128_v27, %v647_v48  ;;  %v695_v52 = vmax.f32 %v645_v45, 0.0 }
 0x1d2   : > { %v698_v51 = vmax.f32 %v656_v47, 0.0 }
 0x1d3   : > { %v696_v53 = vmax.f32 %v648_v49, 0.0 }
 0x1d4   : > { %v710_v54 = vpack.c.bf16 %v698_v51, %v697_v50 }
 0x1d5   : > { %v709_v55 = vpack.c.bf16 %v696_v53, %v695_v52  ;;  %v1247_v56 = vpop.f32.mrb[8].mxu1 }
 0x1d6   : > { %v669_v57 = vadd.f32 %v1247_v56, %v1128_v27  ;;  %v660_v58 = vpop.f32.mrb[9].mxu1 }
 0x1d7   : > { %v661_v59 = vadd.f32 %v1128_v27, %v660_v58  ;;  %v1248_v60 = vpop.f32.mrb[10].mxu1  ;;  %1259 = vmatprep.mubr.msk.bf16.mxu0 %vm730_vm2, %v709_v55 }
 0x1d8   : > { %v672_v61 = vadd.f32 %v1248_v60, %v1128_v27  ;;  %v663_v62 = vpop.f32.mrb[11].mxu1  ;;  %1260 = vmatmul.mubr.msk.bf16.gmra.mrb[20].mxu0 %vm730_vm2, %v710_v54  ;;  %v701_v0 = vmax.f32 %v669_v57, 0.0 }
 0x1d9   : > { %v664_v63 = vadd.f32 %v1128_v27, %v663_v62  ;;  %v699_v2 = vmax.f32 %v661_v59, 0.0 }
 0x1da   : > { %v702_v1 = vmax.f32 %v672_v61, 0.0 }
 0x1db   : > { %v700_v3 = vmax.f32 %v664_v63, 0.0 }
 0x1dc   : > { %v712_v4 = vpack.c.bf16 %v702_v1, %v701_v0 }
 0x1dd   : > { %v711_v5 = vpack.c.bf16 %v700_v3, %v699_v2  ;;  %v1251_v6 = vpop.f32.mrb[12].mxu1 }
 0x1de   : > { %v685_v7 = vadd.f32 %v1251_v6, %v1128_v27  ;;  %v676_v8 = vpop.f32.mrb[13].mxu1 }
 0x1df   : > { %v677_v9 = vadd.f32 %v1128_v27, %v676_v8  ;;  %v1252_v10 = vpop.f32.mrb[14].mxu1  ;;  %1263 = vmatprep.mubr.msk.bf16.mxu0 %vm730_vm2, %v711_v5 }
 0x1e0   : > { %v688_v11 = vadd.f32 %v1252_v10, %v1128_v27  ;;  %v679_v12 = vpop.f32.mrb[15].mxu1  ;;  %1264 = vmatmul.mubr.msk.bf16.gmra.mrb[24].mxu0 %vm730_vm2, %v712_v4  ;;  %v705_v14 = vmax.f32 %v685_v7, 0.0 }
 0x1e1   : > { %v680_v13 = vadd.f32 %v1128_v27, %v679_v12  ;;  %v703_v16 = vmax.f32 %v677_v9, 0.0 }
 0x1e2   : > { %v706_v15 = vmax.f32 %v688_v11, 0.0 }
 0x1e3   : > { %v704_v17 = vmax.f32 %v680_v13, 0.0 }
 0x1e4   : > { %v714_v18 = vpack.c.bf16 %v706_v15, %v705_v14  ;;  %v1151_v14 = vld [vmem:[%s1533_s8] ss:$0 sm:$0xff] }
 0x1e5   : > { %v713_v19 = vpack.c.bf16 %v704_v17, %v703_v16 }
 0x1e7   : > { %1267 = vmatprep.mubr.msk.bf16.mxu0 %vm730_vm2, %v713_v19 }
 0x1e8   : > { %1268 = vmatmul.mubr.msk.bf16.gmra.mrb[28].mxu0 %vm730_vm2, %v714_v18 }
 0x2a3   : > { %v1257_v22 = vpop.f32.mrb[16].mxu0 }
 0x2a4   : > { %v798_v23 = vadd.f32 %v1257_v22, %v1141_v21  ;;  %v789_v24 = vpop.f32.mrb[17].mxu0 }
 0x2a5   : > { %v790_v25 = vadd.f32 %v1141_v21, %v789_v24  ;;  %v1258_v26 = vpop.f32.mrb[18].mxu0 }
 0x2a6   : > { %v801_v27 = vadd.f32 %v1258_v26, %v1141_v21  ;;  %v792_v28 = vpop.f32.mrb[19].mxu0  ;;  %v854_v30 = vmax.f32 %v798_v23, 0.0 }
 0x2a7   : > { %v793_v29 = vadd.f32 %v1141_v21, %v792_v28  ;;  %v852_v32 = vmax.f32 %v790_v25, 0.0 }
 0x2a8   : > { %v855_v31 = vmax.f32 %v801_v27, 0.0 }
 0x2a9   : > { %v853_v33 = vmax.f32 %v793_v29, 0.0 }
 0x2aa   : > { %v869_v34 = vpack.c.bf16 %v855_v31, %v854_v30 }
 0x2ab   : > { %v868_v35 = vpack.c.bf16 %v853_v33, %v852_v32  ;;  %v1261_v36 = vpop.f32.mrb[20].mxu0 }
 0x2ac   : > { %v814_v37 = vadd.f32 %v1261_v36, %v1141_v21  ;;  %v805_v38 = vpop.f32.mrb[21].mxu0 }
 0x2ad   : > { %v806_v39 = vadd.f32 %v1141_v21, %v805_v38  ;;  %v1262_v40 = vpop.f32.mrb[22].mxu0  ;;  %1279 = vmatprep.mubr.msk.bf16.mxu1 %vm569_vm1, %v868_v35 }
 0x2ae   : > { %v817_v41 = vadd.f32 %v1262_v40, %v1141_v21  ;;  %v808_v42 = vpop.f32.mrb[23].mxu0  ;;  %1280 = vmatmul.mubr.msk.bf16.vlgmr.msra.gmra.mrb[16].mxu1 %vm569_vm1, %v869_v34  ;;  %v858_v44 = vmax.f32 %v814_v37, 0.0 }
 0x2af   : > { %v809_v43 = vadd.f32 %v1141_v21, %v808_v42  ;;  %v856_v46 = vmax.f32 %v806_v39, 0.0 }
 0x2b0   : > { %v859_v45 = vmax.f32 %v817_v41, 0.0 }
 0x2b1   : > { %v857_v47 = vmax.f32 %v809_v43, 0.0 }
 0x2b2   : > { %v871_v48 = vpack.c.bf16 %v859_v45, %v858_v44 }
 0x2b3   : > { %v870_v49 = vpack.c.bf16 %v857_v47, %v856_v46  ;;  %v1265_v50 = vpop.f32.mrb[24].mxu0 }
 0x2b4   : > { %v830_v51 = vadd.f32 %v1265_v50, %v1141_v21  ;;  %v821_v52 = vpop.f32.mrb[25].mxu0 }
 0x2b5   : > { %v822_v53 = vadd.f32 %v1141_v21, %v821_v52  ;;  %v1266_v54 = vpop.f32.mrb[26].mxu0  ;;  %1283 = vmatprep.mubr.msk.bf16.mxu1 %vm569_vm1, %v870_v49 }
 0x2b6   : > { %v833_v55 = vadd.f32 %v1266_v54, %v1141_v21  ;;  %v824_v56 = vpop.f32.mrb[27].mxu0  ;;  %1284 = vmatmul.mubr.msk.bf16.gmra.mrb[20].mxu1 %vm569_vm1, %v871_v48  ;;  %v862_v58 = vmax.f32 %v830_v51, 0.0 }
 0x2b7   : > { %v825_v57 = vadd.f32 %v1141_v21, %v824_v56  ;;  %v860_v60 = vmax.f32 %v822_v53, 0.0 }
 0x2b8   : > { %v863_v59 = vmax.f32 %v833_v55, 0.0 }
 0x2b9   : > { %v861_v61 = vmax.f32 %v825_v57, 0.0 }
 0x2ba   : > { %v873_v62 = vpack.c.bf16 %v863_v59, %v862_v58 }
 0x2bb   : > { %v872_v63 = vpack.c.bf16 %v861_v61, %v860_v60  ;;  %v1269_v0 = vpop.f32.mrb[28].mxu0 }
 0x2bc   : > { %v846_v1 = vadd.f32 %v1269_v0, %v1141_v21  ;;  %v837_v2 = vpop.f32.mrb[29].mxu0 }
 0x2bd   : > { %v838_v3 = vadd.f32 %v1141_v21, %v837_v2  ;;  %v1270_v4 = vpop.f32.mrb[30].mxu0  ;;  %1287 = vmatprep.mubr.msk.bf16.mxu1 %vm569_vm1, %v872_v63 }
 0x2be   : > { %v849_v5 = vadd.f32 %v1270_v4, %v1141_v21  ;;  %v840_v6 = vpop.f32.mrb[31].mxu0  ;;  %1288 = vmatmul.mubr.msk.bf16.gmra.mrb[24].mxu1 %vm569_vm1, %v873_v62  ;;  %v866_v8 = vmax.f32 %v846_v1, 0.0 }
 0x2bf   : > { %v841_v7 = vadd.f32 %v1141_v21, %v840_v6  ;;  %v864_v10 = vmax.f32 %v838_v3, 0.0 }
 0x2c0   : > { %v867_v9 = vmax.f32 %v849_v5, 0.0 }
 0x2c1   : > { %v865_v11 = vmax.f32 %v841_v7, 0.0 }
 0x2c2   : > { %v875_v12 = vpack.c.bf16 %v867_v9, %v866_v8 }
 0x2c3   : > { %v874_v13 = vpack.c.bf16 %v865_v11, %v864_v10 }
 0x2c5   : > { %1291 = vmatprep.mubr.msk.bf16.mxu1 %vm569_vm1, %v874_v13 }
 0x2c6   : > { %1292 = vmatmul.mubr.msk.bf16.gmra.mrb[28].mxu1 %vm569_vm1, %v875_v12 }
 0x381   : > { %v1281_v15 = vpop.f32.mrb[16].mxu1 }
 0x382   : > { %v982_v16 = vadd.f32 %v1281_v15, %v1151_v14  ;;  %v973_v17 = vpop.f32.mrb[17].mxu1 }
 0x383   : > { %v974_v18 = vadd.f32 %v1151_v14, %v973_v17  ;;  %v1282_v19 = vpop.f32.mrb[18].mxu1 }
 0x384   : > { %1038 = vst.msk [vmem:[%s1488_s10 + $0x10] sm:$0xff] %vm384_vm0, %v982_v16  ;;  %v985_v20 = vadd.f32 %v1282_v19, %v1151_v14  ;;  %v976_v21 = vpop.f32.mrb[19].mxu1 }
 0x385   : > { %1036 = vst.msk [vmem:[%s1488_s10] sm:$0xff] %vm384_vm0, %v974_v18  ;;  %v977_v22 = vadd.f32 %v1151_v14, %v976_v21 }
 0x386   : > { %1039 = vst.msk [vmem:[%s1488_s10 + $0x18] sm:$0xff] %vm384_vm0, %v985_v20 }
 0x387   : > { %1037 = vst.msk [vmem:[%s1488_s10 + $0x8] sm:$0xff] %vm384_vm0, %v977_v22 }
 0x389   : > { %v1285_v23 = vpop.f32.mrb[20].mxu1 }
 0x38a   : > { %v998_v24 = vadd.f32 %v1285_v23, %v1151_v14  ;;  %v989_v25 = vpop.f32.mrb[21].mxu1 }
 0x38b   : > { %v990_v26 = vadd.f32 %v1151_v14, %v989_v25  ;;  %v1286_v27 = vpop.f32.mrb[22].mxu1 }
 0x38c   : > { %1042 = vst.msk [vmem:[%s1488_s10 + $0x30] sm:$0xff] %vm384_vm0, %v998_v24  ;;  %v1001_v28 = vadd.f32 %v1286_v27, %v1151_v14  ;;  %v992_v29 = vpop.f32.mrb[23].mxu1 }
 0x38d   : > { %1040 = vst.msk [vmem:[%s1488_s10 + $0x20] sm:$0xff] %vm384_vm0, %v990_v26  ;;  %v993_v30 = vadd.f32 %v1151_v14, %v992_v29 }
 0x38e   : > { %1043 = vst.msk [vmem:[%s1488_s10 + $0x38] sm:$0xff] %vm384_vm0, %v1001_v28 }
 0x38f   : > { %1041 = vst.msk [vmem:[%s1488_s10 + $0x28] sm:$0xff] %vm384_vm0, %v993_v30 }
 0x391   : > { %v1289_v31 = vpop.f32.mrb[24].mxu1 }
 0x392   : > { %v1014_v32 = vadd.f32 %v1289_v31, %v1151_v14  ;;  %v1005_v33 = vpop.f32.mrb[25].mxu1 }
 0x393   : > { %v1006_v34 = vadd.f32 %v1151_v14, %v1005_v33  ;;  %v1290_v35 = vpop.f32.mrb[26].mxu1 }
 0x394   : > { %1046 = vst.msk [vmem:[%s1488_s10 + $0x50] sm:$0xff] %vm384_vm0, %v1014_v32  ;;  %v1017_v36 = vadd.f32 %v1290_v35, %v1151_v14  ;;  %v1008_v37 = vpop.f32.mrb[27].mxu1 }
 0x395   : > { %1044 = vst.msk [vmem:[%s1488_s10 + $0x40] sm:$0xff] %vm384_vm0, %v1006_v34  ;;  %v1009_v38 = vadd.f32 %v1151_v14, %v1008_v37 }
 0x396   : > { %1047 = vst.msk [vmem:[%s1488_s10 + $0x58] sm:$0xff] %vm384_vm0, %v1017_v36 }
 0x397   : > { %1045 = vst.msk [vmem:[%s1488_s10 + $0x48] sm:$0xff] %vm384_vm0, %v1009_v38 }
 0x399   : > { %v1293_v39 = vpop.f32.mrb[28].mxu1 }
 0x39a   : > { %v1030_v40 = vadd.f32 %v1293_v39, %v1151_v14  ;;  %v1021_v41 = vpop.f32.mrb[29].mxu1 }
 0x39b   : > { %v1022_v42 = vadd.f32 %v1151_v14, %v1021_v41  ;;  %v1294_v43 = vpop.f32.mrb[30].mxu1 }
 0x39c   : > { %1050 = vst.msk [vmem:[%s1488_s10 + $0x70] sm:$0xff] %vm384_vm0, %v1030_v40  ;;  %v1033_v44 = vadd.f32 %v1294_v43, %v1151_v14  ;;  %v1024_v45 = vpop.f32.mrb[31].mxu1 }
 0x39d   : > { %1048 = vst.msk [vmem:[%s1488_s10 + $0x60] sm:$0xff] %vm384_vm0, %v1022_v42  ;;  %v1025_v46 = vadd.f32 %v1151_v14, %v1024_v45 }
 0x39e   : > { %1051 = vst.msk [vmem:[%s1488_s10 + $0x78] sm:$0xff] %vm384_vm0, %v1033_v44 }
 0x39f   : > { %1049 = vst.msk [vmem:[%s1488_s10 + $0x68] sm:$0xff] %vm384_vm0, %v1025_v46 }
 0x3a0 PF: > { %s19_s30 = sadd.s32 1, %s1320_s30  }
 0x3a1   : > { %p16_p4 = scmp.ge.s32.totalorder %s19_s30, 4  }
 0x3a3   :  { %18 = sbr.rel (!%p16_p4) target bundleno = 1 (0x1), region = 86 }

</bundles_post_ra>
